<compile_context>
chip_gen: v5e
topology: v5e:2x2
jax: 0.10.0
libtpu: 0.0.40
codegen_flags: <defaults>
</compile_context>

<pallas_src>
import functools

import jax
import jax.numpy as jnp
import numpy as np
from jax import lax
from jax.experimental import pallas as pl
from jax.experimental.pallas import tpu as pltpu


def _round_up(a, b):
    return (a + b - 1) // b * b


def _vmem_limit_bytes():
    """Per-generation VMEM cap: leave compiler headroom on 64-MiB chips (v7x)."""
    phys = 128 * 1024 * 1024
    try:
        phys = int(getattr(pltpu.get_tpu_info(), "vmem_capacity_bytes", phys))
    except Exception:
        pass
    if phys <= 64 * 1024 * 1024:          # v7x-class chip
        return 48 * 1024 * 1024
    return 64 * 1024 * 1024               # v5e / v6e


def w_normalize_kernel(w_ref, wn_ref):
    """One-shot column L2 normalization of W, cast to the MXU operand dtype."""
    w = w_ref[...].astype(jnp.float32)
    # 1/max(||w||,1e-12) == rsqrt(max(||w||^2,1e-24)) -> EUP rsqrt, no divide.
    inv = lax.rsqrt(jnp.maximum(jnp.sum(w * w, axis=0, keepdims=True), 1e-24))
    wn_ref[...] = (w * inv).astype(wn_ref.dtype)


def amsoftmax_tile_kernel(xn_ref, w_ref, lab_ref, loss_ref, corr_ref,
                          m_scr, l_scr, t_scr, idx_scr,
                          *, margin, scale, c_real, mask_cols, normalize_w):
    j = pl.program_id(1)
    n_j = pl.num_programs(1)
    tn = w_ref.shape[-1]

    @pl.when(j == 0)
    def _init():
        m_scr[...] = jnp.full_like(m_scr, -1e30)   # running max
        l_scr[...] = jnp.zeros_like(l_scr)         # running sum-exp
        t_scr[...] = jnp.zeros_like(t_scr)         # target logit
        idx_scr[...] = jnp.zeros_like(idx_scr)     # running argmax (global idx)

    if normalize_w:
        # Fused column L2 normalization of the raw f32 (D, tn) W tile (used when
        # W is streamed only once, i.e. a single batch tile).
        w = w_ref[...].astype(jnp.float32)
        inv = lax.rsqrt(jnp.maximum(jnp.sum(w * w, axis=0, keepdims=True), 1e-24))
        w_op = (w * inv).astype(xn_ref.dtype)
    else:
        w_op = w_ref[...]                          # pre-normalized bf16 W

    # cos(theta) tile on the MXU: x rows are already L2-normalized + bf16-cast
    # in the wrapper, so no per-tile cast / inv-norm multiply is needed here.
    costh = jnp.dot(xn_ref[...], w_op, preferred_element_type=jnp.float32)
    tm = costh.shape[0]

    lab = lab_ref[...]                                         # (tm,1) int32, global
    base = j * tn                                              # scalar (SMEM math)
    col = lax.broadcasted_iota(jnp.int32, (tm, tn), 1)         # tile-LOCAL indices
    colf = lax.broadcasted_iota(jnp.float32, (tm, tn), 1)      # same, f32 (exact <tn)
    onehot = col == (lab - base)

    logits = scale * (costh - jnp.where(onehot, margin, 0.0))
    if mask_cols:
        # Only the last class tile can contain padding (c_pad = round_up(C, tn)),
        # so padded columns never win the max nor feed the sum-exp.
        logits = jnp.where(col < (c_real - base), logits, -1e30)

    # Target logit: each row's label lies in exactly one class tile.
    t_scr[...] += jnp.sum(jnp.where(onehot, logits, 0.0), axis=1, keepdims=True)

    # --- online softmax + running argmax (lowest index on exact ties) -------
    tile_max = jnp.max(logits, axis=1, keepdims=True)
    arg_loc = jnp.min(jnp.where(logits >= tile_max, colf, float(tn)),
                      axis=1, keepdims=True).astype(jnp.int32)
    m_old = m_scr[...]
    m_new = jnp.maximum(m_old, tile_max)
    alpha = jnp.exp(m_old - m_new)
    l_scr[...] = alpha * l_scr[...] + jnp.sum(jnp.exp(logits - m_new),
                                              axis=1, keepdims=True)
    idx_scr[...] = jnp.where(tile_max > m_old, arg_loc + base, idx_scr[...])
    m_scr[...] = m_new

    @pl.when(j == n_j - 1)
    def _finalize():
        lse = m_scr[...] + jnp.log(l_scr[...])
        loss_ref[...] = lse - t_scr[...]                                    # per-row CE
        corr_ref[...] = (idx_scr[...] == lab_ref[...]).astype(jnp.float32)  # top-1 hit


def am_softmax_forward(x, W, label, margin=0.3, scale=15.0, *,
                       mxu_dtype=jnp.bfloat16, tm_max=1024, tn_max=1024):
    """Returns (loss, prec1) with the same semantics as PyTorch AMSoftmax.forward."""
    B, D = x.shape
    Dw, C = W.shape
    assert Dw == D and label.shape[0] == B

    vmem_limit = _vmem_limit_bytes()
    x_item = jnp.dtype(mxu_dtype).itemsize

    # --- tile selection ------------------------------------------------------
    sub = 16 if x_item == 2 else 8               # bf16 packs 16 rows per sublane pair
    tn = min(_round_up(C, 128), max(128, _round_up(tn_max, 128)))
    c_pad = _round_up(C, tn)

    budget = int(0.7 * vmem_limit)               # leave room for pipeline + temps
    tm = min(_round_up(tm_max, sub), _round_up(B, sub))
    while tm > sub:
        need = (2 * tm * D * x_item              # x tiles (double-buffered, bf16)
                + 2 * D * tn * 4                 # W tiles (double-buffered, worst: f32)
                + 3 * tm * tn * 4                # logits / exp temporaries (f32)
                + 2 * D * tn * 4                 # fused W-normalization temporaries
                + 12 * tm * 128 * 4)             # (tm,1) blocks, lane-padded to 128
        if need <= budget:
            break
        tm -= sub
    b_pad = _round_up(B, tm)
    n_bt = b_pad // tm

    # --- x: L2-normalize rows once in f32, cast to MXU dtype, then pad -------
    xf = x.astype(jnp.float32)
    x_n = xf * lax.rsqrt(jnp.maximum(jnp.sum(xf * xf, axis=1, keepdims=True), 1e-24))
    x_p = jnp.pad(x_n.astype(mxu_dtype), ((0, b_pad - B), (0, 0)))
    lab_p = jnp.pad(label.reshape(-1, 1).astype(jnp.int32), ((0, b_pad - B), (0, 0)))
    w_p = jnp.pad(W.astype(jnp.float32), ((0, 0), (0, c_pad - C)))

    # --- W handling: fuse normalization when W is streamed only once ---------
    fuse_wnorm = (n_bt == 1)
    if fuse_wnorm:
        w_in = w_p                               # raw f32 W; normalized in-kernel
    else:
        w_in = pl.pallas_call(                   # hoisted, batch-invariant, bf16 out
            w_normalize_kernel,
            out_shape=jax.ShapeDtypeStruct((D, c_pad), mxu_dtype),
            grid=(c_pad // tn,),
            in_specs=[pl.BlockSpec((D, tn), lambda j: (0, j))],
            out_specs=pl.BlockSpec((D, tn), lambda j: (0, j)),
            compiler_params=pltpu.CompilerParams(
                dimension_semantics=("parallel",), vmem_limit_bytes=vmem_limit),
        )(w_p)

    kernel = functools.partial(
        amsoftmax_tile_kernel, margin=float(margin), scale=float(scale),
        c_real=int(C), mask_cols=(c_pad != C), normalize_w=fuse_wnorm)

    loss_rows, correct_rows = pl.pallas_call(
        kernel,
        out_shape=(jax.ShapeDtypeStruct((b_pad, 1), jnp.float32),
                   jax.ShapeDtypeStruct((b_pad, 1), jnp.float32)),
        grid_spec=pltpu.PrefetchScalarGridSpec(
            num_scalar_prefetch=0,
            grid=(n_bt, c_pad // tn),
            in_specs=[
                pl.BlockSpec((tm, D), lambda i, j: (i, 0)),   # pre-normalized bf16 x
                pl.BlockSpec((D, tn), lambda i, j: (0, j)),   # W columns
                pl.BlockSpec((tm, 1), lambda i, j: (i, 0)),   # labels
            ],
            out_specs=(
                pl.BlockSpec((tm, 1), lambda i, j: (i, 0)),   # per-row loss
                pl.BlockSpec((tm, 1), lambda i, j: (i, 0)),   # per-row correct
            ),
            scratch_shapes=[pltpu.VMEM((tm, 1), jnp.float32)] * 3
                           + [pltpu.VMEM((tm, 1), jnp.int32)],
        ),
        compiler_params=pltpu.CompilerParams(
            dimension_semantics=("parallel", "arbitrary"),
            vmem_limit_bytes=vmem_limit),
    )(x_p, w_in, lab_p)

    # Final (tiny) reductions in XLA; padded rows are sliced away.
    loss = jnp.sum(loss_rows[:B, 0]) / B
    prec1 = 100.0 * jnp.sum(correct_rows[:B, 0]) / B
    return loss, prec1


def am_softmax_reference(x, W, label, margin=0.3, scale=15.0, operand_dtype=None):
    """Pure-JAX reference.  With operand_dtype (e.g. bf16) the NORMALIZED operands
    are rounded exactly like the kernel's MXU path, for a tight comparison."""
    x = x.astype(jnp.float32)
    W = W.astype(jnp.float32)
    x_n = x * lax.rsqrt(jnp.maximum(jnp.sum(x * x, axis=1, keepdims=True), 1e-24))
    w_n = W * lax.rsqrt(jnp.maximum(jnp.sum(W * W, axis=0, keepdims=True), 1e-24))
    if operand_dtype is not None:
        x_n = x_n.astype(operand_dtype).astype(jnp.float32)
        w_n = w_n.astype(operand_dtype).astype(jnp.float32)
    costh = jnp.dot(x_n, w_n, precision=lax.Precision.HIGHEST)
    onehot = jax.nn.one_hot(label, W.shape[1], dtype=jnp.float32)
    logits = scale * (costh - margin * onehot)
    logp = jax.nn.log_softmax(logits, axis=1)
    loss = -jnp.mean(jnp.sum(logp * onehot, axis=1))
    prec1 = 100.0 * jnp.mean((jnp.argmax(logits, axis=1) == label).astype(jnp.float32))
    return loss, prec1


if __name__ == "__main__":
    # Small shapes that still exercise the grid with batch padding (20 -> 32)
    # and class padding (300 -> 384).
    B, n_out, n_classes = 20, 32, 300
    margin, scale = 0.3, 15.0

    key = jax.random.PRNGKey(0)
    kx, kw, kl = jax.random.split(key, 3)
    x = jax.random.normal(kx, (B, n_out), dtype=jnp.float32)
    std = float(np.sqrt(2.0 / (n_out + n_classes)))        # xavier_normal_, gain=1
    W = std * jax.random.normal(kw, (n_out, n_classes), dtype=jnp.float32)
    label = jax.random.randint(kl, (B,), 0, n_classes, dtype=jnp.int32)

    # Tight reference: MXU operands rounded to bf16 like the kernel.
    m_loss, m_prec = am_softmax_reference(x, W, label, margin, scale,
                                          operand_dtype=jnp.bfloat16)
    # Loose reference: exact f32.
    f_loss, f_prec = am_softmax_reference(x, W, label, margin, scale)

    # tm_max=16  -> 2 batch tiles x 3 class tiles (hoisted W-normalize path)
    # tm_max=1024-> 1 batch tile  x 3 class tiles (fused in-kernel W-normalize)
    for tm_max in (16, 1024):
        loss, prec1 = am_softmax_forward(x, W, label, margin=margin, scale=scale,
                                         mxu_dtype=jnp.bfloat16,
                                         tm_max=tm_max, tn_max=128)
        jax.block_until_ready((loss, prec1))
        loss, prec1 = float(loss), float(prec1)

        assert np.allclose(loss, float(m_loss), rtol=1e-2, atol=1e-2), \
            (tm_max, loss, float(m_loss))
        assert np.allclose(loss, float(f_loss), rtol=5e-2, atol=5e-2), \
            (tm_max, loss, float(f_loss))
        assert (np.allclose(prec1, float(m_prec), atol=1e-3)
                or np.allclose(prec1, float(f_prec), atol=1e-3)), \
            (tm_max, prec1, float(m_prec), float(f_prec))

    print("KERNEL_OK")
</pallas_src>

<mosaic_0001>
module attributes {stable_mosaic.version = 11 : i64} {
  func.func @w_normalize_kernel(%arg0: i32, %arg1: memref<32x128xf32, #tpu.memory_space<vmem>>, %arg2: memref<32x128xbf16, #tpu.memory_space<vmem>>) attributes {dimension_semantics = [#tpu.dimension_semantics<parallel>], iteration_bounds = array<i64: 3>, scalar_prefetch = 0 : i64, scratch_operands = 0 : i64, tpu.core_type = #tpu.core_type<tc>, window_params = [{transform_indices = @transform_0, window_bounds = array<i64: 32, 128>}, {transform_indices = @transform_1, window_bounds = array<i64: 32, 128>}]} {
    %c0 = arith.constant 0 : index
    %c0_0 = arith.constant 0 : index
    %0 = vector.load %arg1[%c0, %c0_0] : memref<32x128xf32, #tpu.memory_space<vmem>>, vector<32x128xf32>
    %1 = arith.mulf %0, %0 : vector<32x128xf32>
    %cst = arith.constant dense<0.000000e+00> : vector<128xf32>
    %2 = vector.multi_reduction <add>, %1, %cst [0] : vector<32x128xf32> to vector<128xf32>
    %3 = vector.shape_cast %2 : vector<128xf32> to vector<1x128xf32>
    %cst_1 = arith.constant 1.000000e-24 : f32
    %4 = vector.broadcast %cst_1 : f32 to vector<1x128xf32>
    %5 = arith.maximumf %3, %4 : vector<1x128xf32>
    %6 = math.rsqrt %5 : vector<1x128xf32>
    %7 = vector.broadcast %6 : vector<1x128xf32> to vector<32x128xf32>
    %8 = arith.mulf %0, %7 : vector<32x128xf32>
    %9 = arith.truncf %8 : vector<32x128xf32> to vector<32x128xbf16>
    %c0_2 = arith.constant 0 : index
    %c0_3 = arith.constant 0 : index
    %10 = vector.load %arg2[%c0_2, %c0_3] : memref<32x128xbf16, #tpu.memory_space<vmem>>, vector<32x128xbf16>
    tpu.vector_store %arg2[%c0_2, %c0_3], %9 {strides = array<i32>} : memref<32x128xbf16, #tpu.memory_space<vmem>>, vector<32x128xbf16>,
    return
  }
  func.func @transform_0(%arg0: i32) -> (i32, i32) {
    %c0_i32 = arith.constant 0 : i32
    %c0_i32_0 = arith.constant 0 : i32
    return %c0_i32, %arg0 : i32, i32
  }
  func.func @transform_1(%arg0: i32) -> (i32, i32) {
    %c0_i32 = arith.constant 0 : i32
    %c0_i32_0 = arith.constant 0 : i32
    return %c0_i32, %arg0 : i32, i32
  }
}

</mosaic_0001>

<bundles_post_ra>
// kernel: tpu_custom_call.1
= control target key start
LH: loop header
LB: loop body
LE: loop exit
PB: predicated region body
PF: predicated region fallthrough
CT: control target
= control target key end

     0   :  { %6 = vsyncpa [#allocation3], 0  ;;  %s579_s0 = inlined_call_operand.hbm [shape: f32[32,384], index: 0, kind: input, shape index: {}]   ;;  %s580_s1 = inlined_call_operand.hbm [shape: bf16[32,384], index: 1, kind: output, shape index: {}]  }
   0x1   :  { %8 = vsyncpa [#allocation3 + $0x1], 0 }
   0x2   :  { %9 = vsyncpa [#allocation4], 0 }
   0x3   :  { %11 = vsyncpa [#allocation4 + $0x1], 0  ;;  %s455_s6 = smov 0   ;;  %s457_s7 = smov 0  }
   0x4   :  { %s459_s8 = smov 0   ;;  %s461_s9 = smov 0  }
   0x5 LB: > { %s476_s10 = sadd.s32 4294967295, %s437_s9   ;;  %s264_s11 = sadd.s32 4294967294, %s437_s9   ;;  %s437_s9 = sphi %s461_s9, %s589_s9   ;;  %s433_s8 = sphi %s459_s8, %s588_s8   ;;  %s429_s7 = sphi %s457_s7, %s587_s7   ;;  %s425_s6 = sphi %s455_s6, %s586_s6  }
   0x6   : > { %s480_s12 = sadd.s32 1, %s437_s9   ;;  %s24_s13 = sadd.s32 1, %s433_s8 }
   0x7   : > { %s21_s14 = ssub.s32 %s437_s9, %s480_s12  ;;  %p31_p0 = scmp.ne.s32.totalorder %s433_s8, %s429_s7 }
   0x8   : > { %p22_p1 = scmp.eq.s32.totalorder %s21_s14, 0  ;;  %p32_p2 = scmp.eq.s32.totalorder %s437_s9, 0 }
   0x9   : > { %p37_p3 = scmp.ne.s32.totalorder %s429_s7, %s425_s6  ;;  %p38_p4 = scmp.eq.s32.totalorder %s476_s10, 0 }
   0xa   : > { %s492_s15 = scalar_select %p22_p1, %s433_s8, %s24_s13  }
   0xb   : > { %p494_p5 = por %p32_p2, %p31_p0  ;;  %p498_p6 = por %p38_p4, %p37_p3 }
   0xc   : > { %p61_p7 = scmp.eq.s32.totalorder %s476_s10, 2  ;;  %p67_p8 = scmp.eq.s32.totalorder %s264_s11, 2 }
   0xd   : > { %p299_p9 = scmp.lt.s32.totalorder %s437_s9, 3  ;;  %s87_s20 = sand.u32 1, %s433_s8  }
   0xe   : > { %p504_p10 = por %p61_p7, %p31_p0  ;;  %p508_p11 = por %p67_p8, %p37_p3 }
   0xf   : > { %s268_s21 = sshll.u32 %s437_s9, 3  ;;  %s267_s22 = sshll.u32 %s87_s20, 5 }
  0x10   : > { %s95_s25 = scalar_lea.hbm %s579_s0, %s268_s21  ;;  %s91_s27 = scalar_lea.vmem [#allocation2], %s267_s22 }
  0x11   : > { %s96_s26 = sshll.u32 %s95_s25, 4  ;;  %s98_s28 = sshll.u32 %s91_s27, 4  ;;  %s97_s26 = int_to_ptr.hbm [resolvable:$true] %s96_s26  ;;  %s99_s28 = int_to_ptr.vmem [resolvable:$true] %s98_s28 }
  0x12   : > { %p519_p12 = pnand %p299_p9, %p494_p5  ;;  %p269_p13 = scmp.ge.s32.totalorder %s437_s9, 1 }
  0x13   : > { %s88_s30 = scalar_lea.sflag [#allocation3], %s87_s20  ;;  %s341_s2 = sshra.s32 %s97_s26, 4  ;;  %s342_s2 = int_to_ptr.hbm [resolvable:$true] %s341_s2 }
  0x14   : > { %s343_s3 = scalar_lea.hbm %s342_s2, 32  ;;  %p345_p1 = pneg %p519_p12 }
  0x15   : > { %p344_p0 = scmp.ne.s32.totalorder %s342_s2, %s343_s3  ;;  %s348_s11 = scalar_lea.hbm %s579_s0, 96 }
  0x16   : > { %p349_p4 = scmp.lt.s32.totalorder %s342_s2, %s579_s0  ;;  %p350_p5 = scmp.lt.s32.totalorder %s348_s11, %s343_s3 }
  0x17   : > { %p346_p2 = pnand %p345_p1, %p344_p0 }
  0x18   : > { %p351_p7 = por %p350_p5, %p349_p4 }
  0x19   : > { %p347_p3 = pneg %p346_p2 }
  0x1b   : > { %p352_p8 = pnand %p351_p7, %p347_p3 }
  0x1d   : > { %355 = shalt.err (!%p352_p8)
}
  0x1e   : > { %s439_s16 = smov 384   ;;  %s440_s20 = smov 128  }
  0x1f   : > { %s441_s21 = smov 8   ;;  %p106_p9 = scmp.lt.s32.totalorder %s437_s9, 4 }
  0x20   : > { %294 = dma.hbm_to_vmem [thread:$0]  (!%p519_p12), %s97_s26, 512, %s99_s28, %s88_s30, %s439_s16, %s440_s20, %s441_s21  }
  0x21   : > { %p107_p0 = pnand %p269_p13, %p106_p9 }
  0x22   : > { %s538_s22 = sand.u32 (!%p107_p0), 1, %s429_s7  }
  0x23   : > { %110 = sbr.rel (%p107_p0) target bundleno = 92 (0x5c), region = 24  ;;  %s270_s23 = sshll.u32 (!%p107_p0), %s538_s22, 5 }
  0x24   : > { %s113_s24 = scalar_lea.sflag (!%p107_p0), [#allocation3], %s538_s22  ;;  %s116_s25 = scalar_lea.vmem (!%p107_p0), [#allocation2], %s270_s23 }
  0x28   : > { %416 = dma.done.wait (%p498_p6), %s113_s24, 512  }
  0x29   : > { %418 = vsyncadd (%p498_p6), %s113_s24, 4294966784  ;;  %v136_v0 = vld [vmem:[%s116_s25] sm:$0xff]  ;;  %v137_v1 = vld [vmem:[%s116_s25 + $0x8] sm:$0xff]  ;;  %s271_s17 = sshll.u32 %s538_s22, 4  ;;  %s273_s26 = sshll.u32 %s476_s10, 2 }
  0x2a   : > { %v138_v2 = vld [vmem:[%s116_s25 + $0x10] sm:$0xff]  ;;  %v139_v3 = vld [vmem:[%s116_s25 + $0x18] sm:$0xff]  ;;  %v140_v4 = vmul.f32 %v136_v0, %v136_v0  ;;  %v141_v5 = vmul.f32 %v137_v1, %v137_v1  ;;  %s187_s29 = scalar_lea.hbm %s580_s1, %s273_s26  ;;  %s135_s30 = scalar_lea.vmem [#allocation5], %s271_s17 }
  0x2b   : > { %v142_v6 = vmul.f32 %v138_v2, %v138_v2  ;;  %v143_v7 = vmul.f32 %v139_v3, %v139_v3  ;;  %s188_s2 = sshll.u32 %s135_s30, 4  ;;  %s190_s3 = sshll.u32 %s187_s29, 4  ;;  %s189_s2 = int_to_ptr.vmem [resolvable:$true] %s188_s2  ;;  %s191_s3 = int_to_ptr.hbm [resolvable:$true] %s190_s3 }
  0x2c   : > { %v144_v8 = vadd.f32 %v141_v5, %v140_v4  ;;  %s177_s10 = scalar_lea.sflag [#allocation4], %s538_s22  ;;  %s385_s4 = sshra.s32 %s191_s3, 4  ;;  %s386_s4 = int_to_ptr.hbm [resolvable:$true] %s385_s4 }
  0x2d   : > { %s387_s5 = scalar_lea.hbm %s386_s4, 16  ;;  %s391_s14 = scalar_lea.hbm %s580_s1, 48 }
  0x2e   : > { %v145_v9 = vadd.f32 %v144_v8, %v142_v6  ;;  %p388_p6 = scmp.ne.s32.totalorder %s386_s4, %s387_s5  ;;  %p392_p1 = scmp.lt.s32.totalorder %s386_s4, %s580_s1 }
  0x2f   : > { %p393_p2 = scmp.lt.s32.totalorder %s391_s14, %s387_s5 }
  0x30   : > { %v146_v10 = vadd.f32 %v145_v9, %v143_v7  ;;  %p389_p12 = pnand %p388_p6, %p504_p10 }
  0x31   : > { %p394_p3 = por %p393_p2, %p392_p1 }
  0x32   : > { %v147_v11 = vrot.slane %v146_v10, 4  ;;  %p390_p13 = pneg %p389_p12 }
  0x34   : > { %v148_v12 = vadd.f32 %v147_v11, %v146_v10  ;;  %p395_p4 = pnand %p394_p3, %p390_p13 }
  0x36   : > { %v149_v13 = vrot.slane %v148_v12, 2 }
  0x38   : > { %v150_v14 = vadd.f32 %v149_v13, %v148_v12 }
  0x3a   : > { %v151_v15 = vrot.slane %v150_v14, 1 }
  0x3c   : > { %v152_v16 = vadd.f32 %v151_v15, %v150_v14 }
  0x3e   : > { %v153_v17 = vmax.f32 %v152_v16, 1e-24 }
  0x40   : > { %339 = vrsqrt.f32 %v153_v17  ;;  %vm160_vm0 = vweird.f32 %v153_v17 }
  0x46   : > { %v340_v18 = vpop.eup %339 }
  0x47   : > { %v155_v19 = vmul.f32 %v340_v18, %v153_v17  ;;  %vm161_vm1 = vweird.f32 %v340_v18 }
  0x48   : > { %vm162_vm2 = vmor %vm160_vm0, %vm161_vm1 }
  0x49   : > { %v156_v20 = vmul.f32 %v340_v18, %v155_v19 }
  0x4b   : > { %v157_v21 = vmul.f32 0.5, %v156_v20 }
  0x4d   : > { %v158_v22 = vsub.f32 1.5, %v157_v21 }
  0x4f   : > { %v159_v23 = vmul.f32 %v340_v18, %v158_v22 }
  0x51   : > { %v163_v24 = vsel %vm162_vm2, %v340_v18, %v159_v23 }
  0x52   : > { %v164_v25 = vmul.f32 %v163_v24, %v136_v0  ;;  %v165_v26 = vmul.f32 %v163_v24, %v137_v1  ;;  %v166_v27 = vmul.f32 %v163_v24, %v138_v2  ;;  %v167_v28 = vmul.f32 %v163_v24, %v139_v3 }
  0x54   : > { %v279_v29 = vpack.c.bf16 %v165_v26, %v164_v25  ;;  %v284_v30 = vpack.c.bf16 %v167_v28, %v166_v27 }
  0x56   : > { %280 = vst [vmem:[%s135_s30] sm:$0xff] %v279_v29  }
  0x57   : > { %286 = vst [vmem:[%s135_s30 + $0x8] sm:$0xff] %v284_v30  }
  0x58   : > { %398 = shalt.err (!%p395_p4)
}
  0x59   : > { %s442_s21 = smov 64   ;;  %s443_s22 = smov 192  }
  0x5a   : > { %s444_s23 = smov 4  }
  0x5b   : > { %289 = dma.vmem_to_hbm [thread:$0]  (%p504_p10), %s189_s2, 256, %s191_s3, %s177_s10, %s442_s21, %s443_s22, %s444_s23  }
  0x5c PF: > { %p300_p5 = scmp.ge.s32.totalorder %s437_s9, 2  ;;  %s205_s24 = sand.u32 1, %s425_s6  }
  0x5d   : > { %s206_s25 = scalar_lea.sflag [#allocation4], %s205_s24 }
  0x5e   : > { %p296_p7 = pnand %p300_p5, %p508_p11 }
  0x60   : > { %p297_p8 = pneg %p296_p7 }
  0x62   : > { %420 = dma.done.wait (%p297_p8), %s206_s25, 256  }
  0x63   : > { %422 = vsyncadd (%p297_p8), %s206_s25, 4294967040  ;;  %p14_p9 = scmp.ge.s32.totalorder %s480_s12, 5   ;;  %s586_s6 = smov %s429_s7 }
  0x64   : > { %s587_s7 = smov %s433_s8  ;;  %s588_s8 = smov %s492_s15 }
  0x65   : > { %s589_s9 = smov %s480_s12  ;;  %16 = sbr.rel (!%p14_p9) target bundleno = 5 (0x5), region = 69 }
  0x6a   :  { %212 = vsyncpa [#allocation3], 1 }
  0x6b   :  { %214 = vsyncpa [#allocation3 + $0x1], 1 }
  0x6c   :  { %215 = vsyncpa [#allocation4], 1 }
  0x6d   :  { %217 = vsyncpa [#allocation4 + $0x1], 1 }

</bundles_post_ra>
